<compile_context>
chip_gen: v7x
topology: tpu7x:2x2x1
jax: 0.10.0
libtpu: 0.0.40
codegen_flags: <defaults>
</compile_context>

<pallas_src>
import jax
import jax.numpy as jnp
from jax import lax
from jax.experimental import pallas as pl
from jax.experimental.pallas import tpu as pltpu


_VMEM_BUDGET_BYTES = 32 << 20  # conservative per-core budget (v7x: 64 MiB physical)


def _round_up(x, m):
    return ((x + m - 1) // m) * m


def _tile_vmem_bytes(tv, B, H):
    # double-buffered W tile + bias tile + out tile, double-buffered vec, + headroom
    return 4 * (2 * tv * H + 2 * tv + 2 * B * tv + 2 * B * H) + (2 << 20)


def _pick_v_tile(V, B, H):
    vpad = _round_up(V, 128)
    # Leave >= 2 tiles when the vocab is big enough so the "parallel" grid
    # axis can be sharded across v7x's two TensorCores.
    max_tile = vpad if vpad < 512 else vpad // 2
    for cand in (2048, 1024, 512, 256, 128):
        if cand <= max_tile and _tile_vmem_bytes(cand, B, H) <= _VMEM_BUDGET_BYTES:
            return cand
    return 128


def w2v_logits_kernel(vec_ref, w_ref, b_ref, out_ref):
    """One vocab tile of   logits = vec @ W^T + b.

    vec_ref: (B, H)  f32, constant block index -> VMEM-resident across the grid
    w_ref:   (tv, H) f32, Linear weight tile in native PyTorch (V, H) layout
    b_ref:   (1, tv) f32, bias tile
    out_ref: (B, tv) f32, logits tile (lane-dense: tv % 128 == 0)
    """
    logits = lax.dot_general(
        vec_ref[...], w_ref[...],
        dimension_numbers=(((1,), (1,)), ((), ())),   # contract on H; W stays (tv, H)
        preferred_element_type=jnp.float32)
    out_ref[...] = (logits + b_ref[...]).astype(out_ref.dtype)


def word2vec_predict(x, emb, w, b, *, tv=None):
    """x: (B, S) int token ids; emb: (V, H); w: (V, H) (PyTorch Linear layout);
    b: (V,).  Returns (B, V) float32 logits."""
    B, S = x.shape
    V, H = emb.shape

    # Embedding gather + mean over the sequence, hoisted out of the kernel
    # (perf review #1/#2): reads only the B*S needed rows of the table, once.
    vec = jnp.mean(jnp.take(emb, x, axis=0), axis=1).astype(jnp.float32)   # (B, H)

    # Vocab tiling: lane-dense, VMEM-budgeted.
    if tv is None:
        tv = _pick_v_tile(V, B, H)
    tv = max(128, (tv // 128) * 128)
    Vp = _round_up(V, tv)

    w_p = w.astype(jnp.float32)
    b_p = b.astype(jnp.float32)
    if Vp != V:
        w_p = jnp.pad(w_p, ((0, Vp - V), (0, 0)))
        b_p = jnp.pad(b_p, ((0, Vp - V),))
    b2 = b_p.reshape(1, Vp)
    # TODO(synk): for very large V, optionally stream W in bfloat16 (halves the
    # dominant HBM stream) while keeping the f32 MXU accumulate.

    grid = (Vp // tv,)
    grid_spec = pltpu.PrefetchScalarGridSpec(
        num_scalar_prefetch=0,
        grid=grid,
        in_specs=[
            # vec: constant block index -> DMA'd once, stays resident in VMEM.
            pl.BlockSpec((B, H), lambda j: (0, 0)),
            # Linear weight, native (V, H) layout, tiled along the vocab axis.
            pl.BlockSpec((tv, H), lambda j: (j, 0)),
            # Bias tile (lane axis tiled).
            pl.BlockSpec((1, tv), lambda j: (0, j)),
        ],
        out_specs=pl.BlockSpec((B, tv), lambda j: (0, j)),
    )

    cost = pl.CostEstimate(
        flops=2 * B * H * Vp,
        bytes_accessed=4 * (Vp * H + Vp + B * H + B * Vp),
        transcendentals=0,
    )

    logits = pl.pallas_call(
        w2v_logits_kernel,
        out_shape=jax.ShapeDtypeStruct((B, Vp), jnp.float32),
        grid_spec=grid_spec,
        compiler_params=pltpu.CompilerParams(
            dimension_semantics=("parallel",),           # V tiles independent -> megacore OK
            vmem_limit_bytes=_VMEM_BUDGET_BYTES + (8 << 20),
        ),
        cost_estimate=cost,
    )(vec, w_p, b2)

    return logits[:, :V] if Vp != V else logits


def reference(x, emb, w, b):
    vec = jnp.take(emb, x, axis=0)        # (B, S, H)
    vec = jnp.mean(vec, axis=1)           # (B, H)
    return vec @ w.T + b                  # (B, V)


if __name__ == "__main__":
    # Small, deterministic synthetic shapes consistent with the module
    # (hidden_size default of the module is 120).
    B, S = 8, 12           # batch, sequence length
    V, H = 1024, 120       # vocab_size, hidden_size

    key = jax.random.PRNGKey(0)
    k_x, k_emb, k_w, k_b = jax.random.split(key, 4)

    x = jax.random.randint(k_x, (B, S), minval=0, maxval=V, dtype=jnp.int32)

    # Embedding table (padding_idx=0 -> row 0 zeroed, matching nn.Embedding init)
    emb = jax.random.normal(k_emb, (V, H), dtype=jnp.float32)
    emb = emb.at[0].set(0.0)

    # Linear(hidden, vocab): weight (V, H), bias (V,)
    bound = 1.0 / (H ** 0.5)
    w = jax.random.uniform(k_w, (V, H), minval=-bound, maxval=bound,
                           dtype=jnp.float32)
    b = jax.random.uniform(k_b, (V,), minval=-bound, maxval=bound,
                           dtype=jnp.float32)

    out = word2vec_predict(x, emb, w, b)
    out = jax.block_until_ready(out)

    ref = reference(x, emb, w, b)
    assert out.shape == (B, V)
    assert jnp.allclose(out, ref, atol=1e-4, rtol=1e-4), \
        float(jnp.max(jnp.abs(out - ref)))

    print("KERNEL_OK")
</pallas_src>

<mosaic_0001>
module attributes {stable_mosaic.version = 11 : i64} {
  func.func @w2v_logits_kernel(%arg0: i32, %arg1: memref<8x120xf32, #tpu.memory_space<vmem>>, %arg2: memref<512x120xf32, #tpu.memory_space<vmem>>, %arg3: memref<1x512xf32, #tpu.memory_space<vmem>>, %arg4: memref<8x512xf32, #tpu.memory_space<vmem>>) attributes {dimension_semantics = [#tpu.dimension_semantics<parallel>], iteration_bounds = array<i64: 2>, scalar_prefetch = 0 : i64, scratch_operands = 0 : i64, tpu.core_type = #tpu.core_type<tc>, window_params = [{pipeline_mode = #tpu.pipeline_mode<synchronous>, transform_indices = @transform_0, window_bounds = array<i64: 8, 120>}, {transform_indices = @transform_1, window_bounds = array<i64: 512, 120>}, {transform_indices = @transform_2, window_bounds = array<i64: 1, 512>}, {transform_indices = @transform_3, window_bounds = array<i64: 8, 512>}]} {
    %c0 = arith.constant 0 : index
    %c0_0 = arith.constant 0 : index
    %0 = vector.load %arg1[%c0, %c0_0] : memref<8x120xf32, #tpu.memory_space<vmem>>, vector<8x120xf32>
    %c0_1 = arith.constant 0 : index
    %c0_2 = arith.constant 0 : index
    %1 = vector.load %arg2[%c0_1, %c0_2] : memref<512x120xf32, #tpu.memory_space<vmem>>, vector<512x120xf32>
    %cst = arith.constant dense<0.000000e+00> : vector<8x512xf32>
    %2 = tpu.matmul %0, %1, %cst {dimension_numbers = #tpu.dot_dimension_numbers<[1], [1], [0], [0], [0, 0, 1, 0], [], []>} : vector<8x120xf32>, vector<512x120xf32>, vector<8x512xf32> -> vector<8x512xf32>
    %c0_3 = arith.constant 0 : index
    %c0_4 = arith.constant 0 : index
    %3 = vector.load %arg3[%c0_3, %c0_4] : memref<1x512xf32, #tpu.memory_space<vmem>>, vector<1x512xf32>
    %4 = vector.broadcast %3 : vector<1x512xf32> to vector<8x512xf32>
    %5 = arith.addf %2, %4 : vector<8x512xf32>
    %c0_5 = arith.constant 0 : index
    %c0_6 = arith.constant 0 : index
    %6 = vector.load %arg4[%c0_5, %c0_6] : memref<8x512xf32, #tpu.memory_space<vmem>>, vector<8x512xf32>
    tpu.vector_store %arg4[%c0_5, %c0_6], %5 {strides = array<i32>} : memref<8x512xf32, #tpu.memory_space<vmem>>, vector<8x512xf32>,
    return
  }
  func.func @transform_0(%arg0: i32) -> (i32, i32) {
    %c0_i32 = arith.constant 0 : i32
    %c0_i32_0 = arith.constant 0 : i32
    %c0_i32_1 = arith.constant 0 : i32
    return %c0_i32, %c0_i32_0 : i32, i32
  }
  func.func @transform_1(%arg0: i32) -> (i32, i32) {
    %c0_i32 = arith.constant 0 : i32
    %c0_i32_0 = arith.constant 0 : i32
    return %arg0, %c0_i32 : i32, i32
  }
  func.func @transform_2(%arg0: i32) -> (i32, i32) {
    %c0_i32 = arith.constant 0 : i32
    %c0_i32_0 = arith.constant 0 : i32
    return %c0_i32, %arg0 : i32, i32
  }
  func.func @transform_3(%arg0: i32) -> (i32, i32) {
    %c0_i32 = arith.constant 0 : i32
    %c0_i32_0 = arith.constant 0 : i32
    return %c0_i32, %arg0 : i32, i32
  }
}

</mosaic_0001>

<bundles_post_ra>
// kernel: tpu_custom_call.1
= control target key start
LH: loop header
LB: loop body
LE: loop exit
PB: predicated region body
PF: predicated region fallthrough
CT: control target
= control target key end

     0   :  { %8 = vsyncpa [#allocation3], 0  ;;  %s1323_s0 = inlined_call_operand.vmem [shape: f32[8,120], index: 0, kind: input, shape index: {}]   ;;  %s1324_s1 = inlined_call_operand.vmem [shape: f32[1024,120], index: 1, kind: input, shape index: {}]   ;;  %s1325_s2 = inlined_call_operand.vmem [shape: f32[1,1024], index: 2, kind: input, shape index: {}]   ;;  %s1326_s3 = inlined_call_operand.hbm [shape: f32[8,1024], index: 3, kind: output, shape index: {}]  }
   0x1   :  { %10 = vsyncpa [#allocation3 + $0x1], 0  ;;  %s1071_s12 = smov 0   ;;  %s1073_s13 = smov 0  }
   0x2   :  { %s1075_s14 = smov 0   ;;  %s1077_s15 = smov 0  }
   0x3 LB: > { %s1092_s16 = sadd.s32 4294967295, %s1048_s15   ;;  %s703_s17 = sadd.s32 4294967294, %s1048_s15   ;;  %s1048_s15 = sphi %s1077_s15, %s1334_s15   ;;  %s1044_s14 = sphi %s1075_s14, %s1333_s14   ;;  %s1040_s13 = sphi %s1073_s13, %s1332_s13   ;;  %s1036_s12 = sphi %s1071_s12, %s1331_s12  }
   0x4   : > { %s1096_s18 = sadd.s32 1, %s1048_s15   ;;  %s96_s19 = sadd.s32 1, %s1044_s14 }
   0x5   : > { %s93_s20 = ssub.s32 %s1048_s15, %s1096_s18  ;;  %p106_p0 = scmp.ne.s32.totalorder %s1044_s14, %s1040_s13 }
   0x6   : > { %p94_p1 = scmp.eq.s32.totalorder %s93_s20, 0  ;;  %p107_p2 = scmp.eq.s32.totalorder %s1092_s16, 1 }
   0x7   : > { %p112_p3 = scmp.ne.s32.totalorder %s1040_s13, %s1036_s12  ;;  %p113_p4 = scmp.eq.s32.totalorder %s703_s17, 1 }
   0x8   : > { %s1107_s21 = scalar_select %p94_p1, %s1044_s14, %s96_s19  }
   0x9   : > { %p1109_p5 = por %p107_p2, %p106_p0  ;;  %p1113_p6 = por %p113_p4, %p112_p3 }
   0xa   : > { %p706_p7 = scmp.ge.s32.totalorder %s1048_s15, 1  ;;  %p151_p8 = scmp.lt.s32.totalorder %s1048_s15, 3 }
   0xc   : > { %p152_p9 = pnand %p706_p7, %p151_p8 }
   0xd   : > { %s708_s24 = sshll.u32 (!%p152_p9), %s1092_s16, 6  ;;  %vm278_vm0 = vcmask (!%p152_p9), 982016   ;;  %v1123_v0 = vld [vmem:[%s1323_s0] sm:$0xff] (!%p152_p9)  ;;  %s710_s4 = sshll.u32 (!%p152_p9), %s1092_s16, 2 }
   0xe   : > { %155 = sbr.rel (%p152_p9) target bundleno = 322 (0x142), region = 32  ;;  %p180_p10 = scmp.lt.s32.totalorder (!%p152_p9), %s708_s24, 127  ;;  %815 = vmatprep.mubr.msk.f32.mxu0 (!%p152_p9), %vm278_vm0, %v1123_v0  ;;  %849 = vmatprep.mubr.msk.f32.mxu1 (!%p152_p9), %vm278_vm0, %v1123_v0  ;;  %vm1136_vm1 = vmpackc.low (!%p152_p9), %vm278_vm0, %vm278_vm0 }
   0xf   : > { %p186_p11 = scmp.lt.s32.totalorder (!%p152_p9), %s710_s4, 7  ;;  %s176_s5 = sand.u32 (!%p152_p9), 1, %s1040_s13  }
  0x10   : > { %s707_s9 = sshll.u32 (!%p152_p9), %s176_s5, 5  ;;  %s782_s10 = sshll.u32 (!%p152_p9), %s1092_s16, 9 }
  0x11   : > { %s178_s11 = scalar_lea.vmem (!%p152_p9), [#allocation2], %s707_s9  ;;  %s621_s16 = scalar_lea.sflag (!%p152_p9), [#allocation3], %s176_s5 }
  0x12   : > { %s635_s17 = sshll.u32 (!%p152_p9), %s178_s11, 4  ;;  %s1050_s26 = smov (!%p152_p9), [#allocation2]   ;;  %s1283_s17 = int_to_ptr.vmem [resolvable:$true] %s635_s17 }
  0x13   : > { %s986_s25 = scalar_lea.vmem (!%p152_p9), %s1283_s17, 512 }
  0x14   : > { %p987_p12 = scmp.ne.s32.totalorder (!%p152_p9), %s1283_s17, %s986_s25 }
  0x15   : > { %s1336_s24 = smov (!%p180_p10, %s708_s24), 127  ;;  %s1338_s4 = smov (!%p186_p11, %s710_s4), 7 }
  0x16   : > { %s709_s27 = sshll.u32 %s1336_s24, 3  ;;  %s188_s8 = scalar_lea.vmem %s1325_s2, %s1338_s4 }
  0x17   : > { %s1132_s30 = scalar_lea.vmem %s1324_s1, %s709_s27  ;;  %v256_v1 = vld [vmem:[%s188_s8] sm:$0xf]  ;;  %s1281_s24 = scalar_lea.hbm %s1326_s3, %s782_s10 }
  0x18   : > { %v208_v2 = vld [vmem:[%s1132_s30 + $0x80] sm:$0xff]  ;;  %v209_v3 = vld [vmem:[%s1132_s30 + $0x88] sm:$0xff]  ;;  %v210_v13 = vld [vmem:[%s1132_s30 + $0x90] sm:$0xff]  ;;  %p988_p13 = pnand %p987_p12, %p1109_p5  ;;  %s990_s27 = sshll.u32 %s1050_s26, 4  ;;  %s991_s27 = int_to_ptr.vmem [resolvable:$false] %s990_s27 }
  0x19   : > { %v240_v4 = vld [vmem:[%s1132_s30 + $0x180] sm:$0xff]  ;;  %v851_v5 = vpack.c.bf16 %v209_v3, %v208_v2  ;;  %v241_v6 = vld [vmem:[%s1132_s30 + $0x188] sm:$0xff]  ;;  %v211_v15 = vld [vmem:[%s1132_s30 + $0x98] sm:$0xff]  ;;  %s992_s28 = scalar_lea.vmem %s991_s27, 1024  ;;  %p993_p1 = scmp.lt.s32.totalorder %s1283_s17, %s991_s27 }
  0x1a   : > { %v192_v7 = vld [vmem:[%s1132_s30] sm:$0xff]  ;;  %v193_v8 = vld [vmem:[%s1132_s30 + $0x8] sm:$0xff]  ;;  %v899_v9 = vpack.c.bf16 %v241_v6, %v240_v4  ;;  %v242_v16 = vld [vmem:[%s1132_s30 + $0x190] sm:$0xff]  ;;  %v857_v18 = vpack.c.bf16 %v211_v15, %v210_v13  ;;  %p989_p0 = pneg %p988_p13  ;;  %p994_p2 = scmp.lt.s32.totalorder %s992_s28, %s986_s25 }
  0x1b   : > { %v854_v10 = vpack.c.bf16 %v193_v8, %v192_v7  ;;  %v224_v11 = vld [vmem:[%s1132_s30 + $0x100] sm:$0xff]  ;;  %v225_v12 = vld [vmem:[%s1132_s30 + $0x108] sm:$0xff]  ;;  %853 = vmatprep.subr.msk.bf16.mxu0 %vm1136_vm1, %v851_v5  ;;  %v243_v17 = vld [vmem:[%s1132_s30 + $0x198] sm:$0xff] }
  0x1c   : > { %v902_v14 = vpack.c.bf16 %v225_v12, %v224_v11  ;;  %901 = vmatprep.subr.msk.bf16.mxu1 %vm1136_vm1, %v899_v9  ;;  %v905_v19 = vpack.c.bf16 %v243_v17, %v242_v16  ;;  %v194_v20 = vld [vmem:[%s1132_s30 + $0x10] sm:$0xff]  ;;  %v195_v21 = vld [vmem:[%s1132_s30 + $0x18] sm:$0xff]  ;;  %v212_v24 = vld [vmem:[%s1132_s30 + $0xa0] sm:$0xff]  ;;  %p995_p3 = por %p994_p2, %p993_p1 }
  0x1d   : > { %856 = vmatpush3.bf16.xpose.msk.msra.mxu0 %vm1136_vm1, %v854_v10  ;;  %v226_v22 = vld [vmem:[%s1132_s30 + $0x110] sm:$0xff]  ;;  %v227_v23 = vld [vmem:[%s1132_s30 + $0x118] sm:$0xff]  ;;  %v213_v25 = vld [vmem:[%s1132_s30 + $0xa8] sm:$0xff]  ;;  %v860_v28 = vpack.c.bf16 %v195_v21, %v194_v20 }
  0x1e   : > { %904 = vmatpush3.bf16.xpose.msk.msra.mxu1 %vm1136_vm1, %v902_v14  ;;  %859 = vmatprep.subr.msk.bf16.mxu0 %vm1136_vm1, %v857_v18  ;;  %v244_v26 = vld [vmem:[%s1132_s30 + $0x1a0] sm:$0xff]  ;;  %v245_v27 = vld [vmem:[%s1132_s30 + $0x1a8] sm:$0xff]  ;;  %v908_v29 = vpack.c.bf16 %v227_v23, %v226_v22  ;;  %v863_v30 = vpack.c.bf16 %v213_v25, %v212_v24  ;;  %v214_v36 = vld [vmem:[%s1132_s30 + $0xb0] sm:$0xff]  ;;  %p996_p4 = pnand %p995_p3, %p989_p0 }
  0x1f   : > { %907 = vmatprep.subr.msk.bf16.mxu1 %vm1136_vm1, %v905_v19  ;;  %v911_v31 = vpack.c.bf16 %v245_v27, %v244_v26  ;;  %v196_v32 = vld [vmem:[%s1132_s30 + $0x20] sm:$0xff]  ;;  %v197_v33 = vld [vmem:[%s1132_s30 + $0x28] sm:$0xff]  ;;  %v215_v37 = vld [vmem:[%s1132_s30 + $0xb8] sm:$0xff] }
  0x20   : > { %v228_v34 = vld [vmem:[%s1132_s30 + $0x120] sm:$0xff]  ;;  %v229_v35 = vld [vmem:[%s1132_s30 + $0x128] sm:$0xff]  ;;  %v246_v38 = vld [vmem:[%s1132_s30 + $0x1b0] sm:$0xff]  ;;  %v866_v40 = vpack.c.bf16 %v197_v33, %v196_v32  ;;  %v869_v42 = vpack.c.bf16 %v215_v37, %v214_v36  ;;  %v258_v36 = vlaneseq }
  0x21   : > { %v247_v39 = vld [vmem:[%s1132_s30 + $0x1b8] sm:$0xff]  ;;  %v914_v41 = vpack.c.bf16 %v229_v35, %v228_v34  ;;  %v198_v44 = vld [vmem:[%s1132_s30 + $0x30] sm:$0xff]  ;;  %v216_v48 = vld [vmem:[%s1132_s30 + $0xc0] sm:$0xff] }
  0x22   : > { %v917_v43 = vpack.c.bf16 %v247_v39, %v246_v38  ;;  %v199_v45 = vld [vmem:[%s1132_s30 + $0x38] sm:$0xff]  ;;  %v230_v46 = vld [vmem:[%s1132_s30 + $0x130] sm:$0xff]  ;;  %v217_v49 = vld [vmem:[%s1132_s30 + $0xc8] sm:$0xff]  ;;  %v259_v37 = vshrl.u32 %v258_v36, 7 }
  0x23   : > { %v231_v47 = vld [vmem:[%s1132_s30 + $0x138] sm:$0xff]  ;;  %v248_v50 = vld [vmem:[%s1132_s30 + $0x1c0] sm:$0xff]  ;;  %v249_v51 = vld [vmem:[%s1132_s30 + $0x1c8] sm:$0xff]  ;;  %v872_v52 = vpack.c.bf16 %v199_v45, %v198_v44  ;;  %v875_v54 = vpack.c.bf16 %v217_v49, %v216_v48 }
  0x24   : > { %v920_v53 = vpack.c.bf16 %v231_v47, %v230_v46  ;;  %v923_v55 = vpack.c.bf16 %v249_v51, %v248_v50  ;;  %v200_v56 = vld [vmem:[%s1132_s30 + $0x40] sm:$0xff]  ;;  %v201_v57 = vld [vmem:[%s1132_s30 + $0x48] sm:$0xff]  ;;  %v218_v60 = vld [vmem:[%s1132_s30 + $0xd0] sm:$0xff]  ;;  %v260_v38 = vsub.s32 0, %v259_v37  ;;  %v268_v39 = vsub.s32 2, %v259_v37 }
  0x25   : > { %862 = vmatpush3.bf16.xpose.msk.msra.mxu0 %vm1136_vm1, %v860_v28  ;;  %v232_v58 = vld [vmem:[%s1132_s30 + $0x140] sm:$0xff]  ;;  %v233_v59 = vld [vmem:[%s1132_s30 + $0x148] sm:$0xff]  ;;  %v219_v61 = vld [vmem:[%s1132_s30 + $0xd8] sm:$0xff]  ;;  %v878_v2 = vpack.c.bf16 %v201_v57, %v200_v56 }
  0x26   : > { %910 = vmatpush3.bf16.xpose.msk.msra.mxu1 %vm1136_vm1, %v908_v29  ;;  %865 = vmatprep.subr.msk.bf16.mxu0 %vm1136_vm1, %v863_v30  ;;  %v250_v62 = vld [vmem:[%s1132_s30 + $0x1d0] sm:$0xff]  ;;  %v251_v63 = vld [vmem:[%s1132_s30 + $0x1d8] sm:$0xff]  ;;  %v926_v3 = vpack.c.bf16 %v233_v59, %v232_v58  ;;  %v881_v4 = vpack.c.bf16 %v219_v61, %v218_v60  ;;  %v220_v10 = vld [vmem:[%s1132_s30 + $0xe0] sm:$0xff] }
  0x27   : > { %913 = vmatprep.subr.msk.bf16.mxu1 %vm1136_vm1, %v911_v31  ;;  %v929_v5 = vpack.c.bf16 %v251_v63, %v250_v62  ;;  %v202_v6 = vld [vmem:[%s1132_s30 + $0x50] sm:$0xff]  ;;  %v203_v7 = vld [vmem:[%s1132_s30 + $0x58] sm:$0xff]  ;;  %v221_v11 = vld [vmem:[%s1132_s30 + $0xe8] sm:$0xff] }
  0x28   : > { %v234_v8 = vld [vmem:[%s1132_s30 + $0x150] sm:$0xff]  ;;  %v235_v9 = vld [vmem:[%s1132_s30 + $0x158] sm:$0xff]  ;;  %v252_v12 = vld [vmem:[%s1132_s30 + $0x1e0] sm:$0xff]  ;;  %v884_v14 = vpack.c.bf16 %v203_v7, %v202_v6  ;;  %v887_v16 = vpack.c.bf16 %v221_v11, %v220_v10 }
  0x29   : > { %v253_v13 = vld [vmem:[%s1132_s30 + $0x1e8] sm:$0xff]  ;;  %v932_v15 = vpack.c.bf16 %v235_v9, %v234_v8  ;;  %v204_v18 = vld [vmem:[%s1132_s30 + $0x60] sm:$0xff]  ;;  %v222_v22 = vld [vmem:[%s1132_s30 + $0xf0] sm:$0xff] }
  0x2a   : > { %v935_v17 = vpack.c.bf16 %v253_v13, %v252_v12  ;;  %v205_v19 = vld [vmem:[%s1132_s30 + $0x68] sm:$0xff]  ;;  %v236_v20 = vld [vmem:[%s1132_s30 + $0x160] sm:$0xff]  ;;  %v223_v23 = vld [vmem:[%s1132_s30 + $0xf8] sm:$0xff] }
  0x2b   : > { %v237_v21 = vld [vmem:[%s1132_s30 + $0x168] sm:$0xff]  ;;  %v254_v24 = vld [vmem:[%s1132_s30 + $0x1f0] sm:$0xff]  ;;  %v255_v25 = vld [vmem:[%s1132_s30 + $0x1f8] sm:$0xff]  ;;  %v890_v26 = vpack.c.bf16 %v205_v19, %v204_v18  ;;  %v893_v28 = vpack.c.bf16 %v223_v23, %v222_v22 }
  0x2c   : > { %v938_v27 = vpack.c.bf16 %v237_v21, %v236_v20  ;;  %v941_v29 = vpack.c.bf16 %v255_v25, %v254_v24  ;;  %v206_v30 = vld [vmem:[%s1132_s30 + $0x70] sm:$0xff]  ;;  %v207_v31 = vld [vmem:[%s1132_s30 + $0x78] sm:$0xff] }
  0x2d   : > { %868 = vmatpush3.bf16.xpose.msk.msra.mxu0 %vm1136_vm1, %v866_v40  ;;  %v238_v32 = vld [vmem:[%s1132_s30 + $0x170] sm:$0xff]  ;;  %v239_v33 = vld [vmem:[%s1132_s30 + $0x178] sm:$0xff]  ;;  %v896_v34 = vpack.c.bf16 %v207_v31, %v206_v30  ;;  %v264_v40 = vsub.s32 1, %v259_v37 }
  0x2e   : > { %916 = vmatpush3.bf16.xpose.msk.msra.mxu1 %vm1136_vm1, %v914_v41  ;;  %871 = vmatprep.subr.msk.bf16.mxu0 %vm1136_vm1, %v869_v42  ;;  %v944_v35 = vpack.c.bf16 %v239_v33, %v238_v32  ;;  %v272_v41 = vsub.s32 3, %v259_v37  ;;  %v261_v42 = vrot.slane %v256_v1, %v260_v38 }
  0x2f   : > { %919 = vmatprep.subr.msk.bf16.mxu1 %vm1136_vm1, %v917_v43  ;;  %v269_v43 = vrot.slane %v256_v1, %v268_v39 }
  0x30   : > { %v273_v44 = vrot.slane %v256_v1, %v272_v41 }
  0x35   : > { %874 = vmatpush3.bf16.xpose.msk.msra.mxu0 %vm1136_vm1, %v872_v52 }
  0x36   : > { %922 = vmatpush3.bf16.xpose.msk.msra.mxu1 %vm1136_vm1, %v920_v53  ;;  %877 = vmatprep.subr.msk.bf16.mxu0 %vm1136_vm1, %v875_v54 }
  0x37   : > { %925 = vmatprep.subr.msk.bf16.mxu1 %vm1136_vm1, %v923_v55 }
  0x3d   : > { %880 = vmatpush3.bf16.xpose.msk.msra.mxu0 %vm1136_vm1, %v878_v2 }
  0x3e   : > { %928 = vmatpush3.bf16.xpose.msk.msra.mxu1 %vm1136_vm1, %v926_v3  ;;  %883 = vmatprep.subr.msk.bf16.mxu0 %vm1136_vm1, %v881_v4 }
  0x3f   : > { %931 = vmatprep.subr.msk.bf16.mxu1 %vm1136_vm1, %v929_v5 }
  0x45   : > { %886 = vmatpush3.bf16.xpose.msk.msra.mxu0 %vm1136_vm1, %v884_v14 }
  0x46   : > { %934 = vmatpush3.bf16.xpose.msk.msra.mxu1 %vm1136_vm1, %v932_v15  ;;  %889 = vmatprep.subr.msk.bf16.mxu0 %vm1136_vm1, %v887_v16 }
  0x47   : > { %937 = vmatprep.subr.msk.bf16.mxu1 %vm1136_vm1, %v935_v17 }
  0x4d   : > { %892 = vmatpush3.bf16.xpose.msk.msra.mxu0 %vm1136_vm1, %v890_v26 }
  0x4e   : > { %940 = vmatpush3.bf16.xpose.msk.msra.mxu1 %vm1136_vm1, %v938_v27  ;;  %895 = vmatprep.subr.msk.bf16.mxu0 %vm1136_vm1, %v893_v28 }
  0x4f   : > { %943 = vmatprep.subr.msk.bf16.mxu1 %vm1136_vm1, %v941_v29 }
  0x55   : > { %898 = vmatpush3.bf16.xpose.msk.msra.mxu0 %vm1136_vm1, %v896_v34 }
  0x56   : > { %946 = vmatpush3.bf16.xpose.msk.msra.mxu1 %vm1136_vm1, %v944_v35 }
  0x5c   : > { %816 = vmatmul.mubr.msk.f32.vlgmr.msra.gmra.mrb[0].mxu0 %vm278_vm0, %v1123_v0 }
  0x5d   : > { %850 = vmatmul.mubr.msk.f32.vlgmr.msra.gmra.mrb[0].mxu1 %vm278_vm0, %v1123_v0  ;;  %v265_v0 = vrot.slane %v256_v1, %v264_v40 }
 0x12f   : > { %v540_v45 = vpop.f32.mrb[0].mxu0 }
 0x130   : > { %v541_v46 = vadd.f32 %v540_v45, %v261_v42  ;;  %v611_v47 = vpop.f32.mrb[0].mxu1  ;;  %v542_v48 = vpop.f32.mrb[1].mxu0 }
 0x131   : > { %v612_v49 = vadd.f32 %v611_v47, %v269_v43  ;;  %v543_v50 = vadd.f32 %v542_v48, %v265_v0  ;;  %v613_v51 = vpop.f32.mrb[1].mxu1 }
 0x132   : > { %616 = vst [vmem:[%s178_s11] sm:$0xff] %v541_v46  ;;  %v614_v52 = vadd.f32 %v613_v51, %v273_v44 }
 0x133   : > { %618 = vst [vmem:[%s178_s11 + $0x10] sm:$0xff] %v612_v49  ;;  %617 = vst [vmem:[%s178_s11 + $0x8] sm:$0xff] %v543_v50 }
 0x134   : > { %619 = vst [vmem:[%s178_s11 + $0x18] sm:$0xff] %v614_v52 }
 0x135   : > { %999 = shalt.err (!%p996_p4)
}
 0x136   : > { %s1000_s29 = scalar_lea.hbm %s1281_s24, 512  ;;  %s1004_s5 = scalar_lea.hbm %s1326_s3, 1024 }
 0x137   : > { %p1001_p7 = scmp.ne.s32.totalorder %s1281_s24, %s1000_s29  ;;  %p1005_p10 = scmp.lt.u32.totalorder %s1281_s24, %s1326_s3 }
 0x138   : > { %p1006_p11 = scmp.lt.u32.totalorder %s1004_s5, %s1000_s29  ;;  %p1008_p13 = scmp.lt.u32.totalorder %s1000_s29, %s1281_s24 }
 0x139   : > { %p1002_p8 = pnand %p1001_p7, %p1109_p5 }
 0x13a   : > { %p1007_p12 = por %p1006_p11, %p1005_p10 }
 0x13b   : > { %p1003_p9 = pneg %p1002_p8 }
 0x13c   : > { %p1009_p0 = por %p1008_p13, %p1007_p12 }
 0x13e   : > { %p1010_p1 = pnand %p1009_p0, %p1003_p9 }
 0x140   : > { %1013 = shalt.err (!%p1010_p1)
}
 0x141   : > { %947 = dma.vmem_to_hbm [thread:$0]  (%p1109_p5), %s1283_s17, 512, %s1281_s24, %s621_s16  }
 0x142 PF: > { %p953_p2 = scmp.ge.s32.totalorder %s1048_s15, 2  ;;  %s647_s8 = sand.u32 1, %s1036_s12  }
 0x143   : > { %s648_s9 = scalar_lea.sflag [#allocation3], %s647_s8 }
 0x144   : > { %p950_p3 = pnand %p953_p2, %p1113_p6 }
 0x146   : > { %1031 = dma.done.wait (!%p950_p3), %s648_s9, 512  }
 0x147   : > { %1033 = vsyncadd (!%p950_p3), %s648_s9, 4294966784  ;;  %p13_p4 = scmp.ge.s32.totalorder %s1096_s18, 4   ;;  %s1331_s12 = smov %s1040_s13 }
 0x148   : > { %s1332_s13 = smov %s1044_s14  ;;  %s1333_s14 = smov %s1107_s21 }
 0x149   : > { %s1334_s15 = smov %s1096_s18  ;;  %15 = sbr.rel (!%p13_p4) target bundleno = 3 (0x3), region = 70 }
 0x150   :  { %653 = vsyncpa [#allocation3], 1 }
 0x151   :  { %655 = vsyncpa [#allocation3 + $0x1], 1 }

</bundles_post_ra>
